<compile_context>
chip_gen: v6e
topology: v6e:2x2x1
jax: 0.10.0
libtpu: 0.0.40
codegen_flags: <defaults>
</compile_context>

<pallas_src>
import functools

import jax
import jax.numpy as jnp
from jax import lax
from jax.experimental import pallas as pl
from jax.experimental.pallas import tpu as pltpu


def _reward_criterion_kernel(inp_ref, seq_ref, rew_ref, out_ref, *,
                             batch, needs_row_mask):
    i = pl.program_id(0)

    inp = inp_ref[...].astype(jnp.float32)   # in-kernel upcast (VPU, hidden under DMA)
    rew = rew_ref[...].astype(jnp.float32)
    seq = seq_ref[...]
    tb, t = inp.shape

    # mask[:, 0] = 1 ; mask[:, c >= 1] = (seq[:, c-1] > 0)
    col = lax.broadcasted_iota(jnp.int32, (tb, t), 1)
    seq_prev = pltpu.roll(seq, shift=1, axis=1)          # wrap into col 0 is overwritten
    tok_mask = jnp.where(col == 0, jnp.float32(1.0),
                         (seq_prev > 0).astype(jnp.float32))
    prod = inp * rew                                     # negation deferred to wrapper

    def _emit(apply_row_mask):
        m, p = tok_mask, prod
        if apply_row_mask:
            # Padded last block: zero pad rows with selects (not multiplies) so
            # unspecified pad data can never poison the sums.
            row = lax.broadcasted_iota(jnp.int32, (tb, t), 0)
            valid = (i * tb + row) < batch
            m = jnp.where(valid, m, jnp.float32(0.0))
            p = jnp.where(valid, p, jnp.float32(0.0))
        part_num = jnp.sum(p * m)       # scalar partial for this block
        part_den = jnp.sum(m)
        # Lane-dense (1, 8, 128) output block: num broadcast on row 0, den on row 1,
        # zeros elsewhere -> single unmasked full-tile store.
        rsel = lax.broadcasted_iota(jnp.int32, out_ref.shape, 1)
        out_ref[...] = jnp.where(rsel == 0, part_num,
                                 jnp.where(rsel == 1, part_den, jnp.float32(0.0)))

    if needs_row_mask:
        last = pl.num_programs(0) - 1

        @pl.when(i == last)
        def _():
            _emit(True)

        @pl.when(i != last)
        def _():
            _emit(False)
    else:
        _emit(False)


def _vmem_budgets():
    """Per-generation (per-step input+temp budget, vmem_limit cap) in bytes."""
    try:
        cap = int(pltpu.get_tpu_info().vmem_capacity_bytes)
    except Exception:
        cap = 64 << 20                       # assume the smallest-VMEM generation (v7x)
    if cap >= (128 << 20):                   # v5e / v6e: 128 MiB physical VMEM
        return 28 << 20, 64 << 20
    return 18 << 20, 40 << 20                # v7x: 64 MiB physical, leave headroom


def _choose_block_rows(batch, seq_len, itemsizes, step_budget):
    # Per row of batch per step:
    #   2 (double buffers) * T * sum(itemsizes) bytes of raw streamed inputs
    # + ~6 full-tile f32 temporaries (upcasts, iota, mask, products) * T * 4 bytes.
    per_row = seq_len * (2 * sum(itemsizes) + 6 * 4)
    tb = step_budget // max(per_row, 1)
    if tb >= batch:
        return batch
    return max(8, (tb // 8) * 8)


def reward_criterion(inp, seq, reward, *, block_rows=None):
    """Pallas RewardCriterion. inp/reward: (B, T) float, seq: (B, T) int."""
    B, T = inp.shape
    itemsizes = (inp.dtype.itemsize, seq.dtype.itemsize, reward.dtype.itemsize)
    step_budget, limit_cap = _vmem_budgets()

    if block_rows is None:
        tb = _choose_block_rows(B, T, itemsizes, step_budget)
    else:
        tb = min(max(int(block_rows), 1), B)
        if tb < B:
            tb = max(8, (tb // 8) * 8)   # keep sublane dim a multiple of 8 when tiling
    num_blocks = pl.cdiv(B, tb)
    needs_row_mask = (B % tb) != 0

    kernel = functools.partial(_reward_criterion_kernel,
                               batch=B, needs_row_mask=needs_row_mask)

    bytes_accessed = B * T * sum(itemsizes) + num_blocks * 8 * 128 * 4
    cost = pl.CostEstimate(flops=5 * B * T, transcendentals=0,
                           bytes_accessed=bytes_accessed)

    # Double-buffered raw inputs + compiler-materialized f32 temps + output tiles + slack.
    vmem_need = (tb * T * (2 * sum(itemsizes) + 6 * 4)
                 + 2 * 8 * 128 * 4
                 + (1 << 20))
    compiler_params = pltpu.CompilerParams(
        # No cross-iteration state -> batch axis is parallel (megacore-shardable on v7x).
        dimension_semantics=("parallel",),
        vmem_limit_bytes=int(min(max(vmem_need, 4 << 20), limit_cap)),
    )

    partials = pl.pallas_call(
        kernel,
        out_shape=jax.ShapeDtypeStruct((num_blocks, 8, 128), jnp.float32),
        grid=(num_blocks,),
        in_specs=[
            pl.BlockSpec((tb, T), lambda i: (i, 0)),
            pl.BlockSpec((tb, T), lambda i: (i, 0)),
            pl.BlockSpec((tb, T), lambda i: (i, 0)),
        ],
        out_specs=pl.BlockSpec((1, 8, 128), lambda i: (i, 0, 0)),
        compiler_params=compiler_params,
        cost_estimate=cost,
    )(inp, seq, reward)

    # Tiny final reduce in the wrapper (num_blocks values): negate once, divide once.
    # Note: partials accumulate in f32; matches typical f32 PyTorch behavior.
    num = -jnp.sum(partials[:, 0, 0])
    den = jnp.sum(partials[:, 1, 0])
    return num / den


def reward_criterion_ref(inp, seq, reward):
    """Pure-JAX reference matching the PyTorch module exactly."""
    inp_f = inp.reshape(-1).astype(jnp.float32)
    rew_f = reward.reshape(-1).astype(jnp.float32)
    m = (seq > 0).astype(jnp.float32)
    mask = jnp.concatenate(
        [jnp.ones((seq.shape[0], 1), jnp.float32), m[:, :-1]], axis=1).reshape(-1)
    out = -inp_f * rew_f * mask
    return jnp.sum(out) / jnp.sum(mask)


if __name__ == "__main__":
    key = jax.random.PRNGKey(0)
    k1, k2, k3 = jax.random.split(key, 3)

    B, T = 20, 128
    inp = -jnp.abs(jax.random.normal(k1, (B, T), dtype=jnp.float32))
    seq = jax.random.randint(k2, (B, T), minval=0, maxval=5, dtype=jnp.int32)
    reward = jax.random.normal(k3, (B, T), dtype=jnp.float32)

    ref = jax.block_until_ready(reward_criterion_ref(inp, seq, reward))

    # Auto block size (single (B, T) block here — B is tiny).
    out_auto = jax.block_until_ready(reward_criterion(inp, seq, reward))
    # Forced multi-block path: grid of 3, last block padded (20 = 8 + 8 + 4).
    out_tiled = jax.block_until_ready(reward_criterion(inp, seq, reward, block_rows=8))
    # Low-precision inputs are upcast in-kernel (no wrapper-side HBM copy pass).
    inp_bf16, rew_bf16 = inp.astype(jnp.bfloat16), reward.astype(jnp.bfloat16)
    out_bf16 = jax.block_until_ready(
        reward_criterion(inp_bf16, seq, rew_bf16, block_rows=8))
    ref_bf16 = jax.block_until_ready(reward_criterion_ref(inp_bf16, seq, rew_bf16))

    assert jnp.allclose(out_auto, ref, rtol=1e-5, atol=1e-5), (out_auto, ref)
    assert jnp.allclose(out_tiled, ref, rtol=1e-5, atol=1e-5), (out_tiled, ref)
    assert jnp.allclose(out_bf16, ref_bf16, rtol=1e-5, atol=1e-5), (out_bf16, ref_bf16)
    print("KERNEL_OK")
</pallas_src>

<mosaic_0001>
module attributes {stable_mosaic.version = 11 : i64} {
  func.func @_reward_criterion_kernel(%arg0: i32, %arg1: memref<20x128xf32, #tpu.memory_space<vmem>>, %arg2: memref<20x128xi32, #tpu.memory_space<vmem>>, %arg3: memref<20x128xf32, #tpu.memory_space<vmem>>, %arg4: memref<1x8x128xf32, #tpu.memory_space<vmem>>) attributes {dimension_semantics = [#tpu.dimension_semantics<parallel>], iteration_bounds = array<i64: 1>, scalar_prefetch = 0 : i64, scratch_operands = 0 : i64, tpu.core_type = #tpu.core_type<tc>, window_params = [{transform_indices = @transform_0, window_bounds = array<i64: 20, 128>}, {transform_indices = @transform_1, window_bounds = array<i64: 20, 128>}, {transform_indices = @transform_2, window_bounds = array<i64: 20, 128>}, {transform_indices = @transform_3, window_bounds = array<i64: 1, 8, 128>}]} {
    %c0 = arith.constant 0 : index
    %c0_0 = arith.constant 0 : index
    %0 = vector.load %arg1[%c0, %c0_0] : memref<20x128xf32, #tpu.memory_space<vmem>>, vector<20x128xf32>
    %c0_1 = arith.constant 0 : index
    %c0_2 = arith.constant 0 : index
    %1 = vector.load %arg3[%c0_1, %c0_2] : memref<20x128xf32, #tpu.memory_space<vmem>>, vector<20x128xf32>
    %c0_3 = arith.constant 0 : index
    %c0_4 = arith.constant 0 : index
    %2 = vector.load %arg2[%c0_3, %c0_4] : memref<20x128xi32, #tpu.memory_space<vmem>>, vector<20x128xi32>
    %3 = tpu.iota {dimensions = array<i32: 1>} : vector<20x128xi32>
    %c1_i32 = arith.constant 1 : i32
    %4 = tpu.dynamic_rotate %2 by %c1_i32 dim 1 : vector<20x128xi32>, i32 -> vector<20x128xi32>
    %c0_i32 = arith.constant 0 : i32
    %5 = vector.broadcast %c0_i32 : i32 to vector<20x128xi32>
    %6 = arith.cmpi eq, %3, %5 : vector<20x128xi32>
    %c0_i32_5 = arith.constant 0 : i32
    %7 = vector.broadcast %c0_i32_5 : i32 to vector<20x128xi32>
    %8 = arith.cmpi sgt, %4, %7 : vector<20x128xi32>
    %9 = arith.extui %8 : vector<20x128xi1> to vector<20x128xi32>
    %10 = arith.sitofp %9 : vector<20x128xi32> to vector<20x128xf32>
    %cst = arith.constant 1.000000e+00 : f32
    %11 = vector.broadcast %cst : f32 to vector<20x128xf32>
    %12 = arith.select %6, %11, %10 : vector<20x128xi1>, vector<20x128xf32>
    %13 = arith.mulf %0, %1 : vector<20x128xf32>
    %14 = arith.mulf %13, %12 : vector<20x128xf32>
    %15 = vector.shape_cast %14 : vector<20x128xf32> to vector<1x20x128xf32>
    %cst_6 = arith.constant dense<0.000000e+00> : vector<1xf32>
    %16 = vector.multi_reduction <add>, %15, %cst_6 [1, 2] : vector<1x20x128xf32> to vector<1xf32>
    %17 = vector.shape_cast %16 : vector<1xf32> to vector<1x1x1xf32>
    %18 = vector.extract %17[0, 0, 0] : f32 from vector<1x1x1xf32>
    %19 = vector.shape_cast %12 : vector<20x128xf32> to vector<1x20x128xf32>
    %cst_7 = arith.constant dense<0.000000e+00> : vector<1xf32>
    %20 = vector.multi_reduction <add>, %19, %cst_7 [1, 2] : vector<1x20x128xf32> to vector<1xf32>
    %21 = vector.shape_cast %20 : vector<1xf32> to vector<1x1x1xf32>
    %22 = vector.extract %21[0, 0, 0] : f32 from vector<1x1x1xf32>
    %23 = tpu.iota {dimensions = array<i32: 1>} : vector<1x8x128xi32>
    %c0_i32_8 = arith.constant 0 : i32
    %24 = vector.broadcast %c0_i32_8 : i32 to vector<1x8x128xi32>
    %25 = arith.cmpi eq, %23, %24 : vector<1x8x128xi32>
    %c1_i32_9 = arith.constant 1 : i32
    %26 = vector.broadcast %c1_i32_9 : i32 to vector<1x8x128xi32>
    %27 = arith.cmpi eq, %23, %26 : vector<1x8x128xi32>
    %cst_10 = arith.constant 0.000000e+00 : f32
    %28 = vector.broadcast %22 : f32 to vector<1x8x128xf32>
    %29 = vector.broadcast %cst_10 : f32 to vector<1x8x128xf32>
    %30 = arith.select %27, %28, %29 : vector<1x8x128xi1>, vector<1x8x128xf32>
    %31 = vector.broadcast %18 : f32 to vector<1x8x128xf32>
    %32 = arith.select %25, %31, %30 : vector<1x8x128xi1>, vector<1x8x128xf32>
    %c0_11 = arith.constant 0 : index
    %c0_12 = arith.constant 0 : index
    %c0_13 = arith.constant 0 : index
    %33 = vector.load %arg4[%c0_11, %c0_12, %c0_13] : memref<1x8x128xf32, #tpu.memory_space<vmem>>, vector<1x8x128xf32>
    tpu.vector_store %arg4[%c0_11, %c0_12, %c0_13], %32 {strides = array<i32>} : memref<1x8x128xf32, #tpu.memory_space<vmem>>, vector<1x8x128xf32>,
    return
  }
  func.func @transform_0(%arg0: i32) -> (i32, i32) {
    %c0_i32 = arith.constant 0 : i32
    %c0_i32_0 = arith.constant 0 : i32
    return %arg0, %c0_i32 : i32, i32
  }
  func.func @transform_1(%arg0: i32) -> (i32, i32) {
    %c0_i32 = arith.constant 0 : i32
    %c0_i32_0 = arith.constant 0 : i32
    return %arg0, %c0_i32 : i32, i32
  }
  func.func @transform_2(%arg0: i32) -> (i32, i32) {
    %c0_i32 = arith.constant 0 : i32
    %c0_i32_0 = arith.constant 0 : i32
    return %arg0, %c0_i32 : i32, i32
  }
  func.func @transform_3(%arg0: i32) -> (i32, i32, i32) {
    %c0_i32 = arith.constant 0 : i32
    %c0_i32_0 = arith.constant 0 : i32
    %c0_i32_1 = arith.constant 0 : i32
    return %arg0, %c0_i32, %c0_i32_0 : i32, i32, i32
  }
}

</mosaic_0001>

<bundles_post_ra>
// kernel: tpu_custom_call.1
= control target key start
LH: loop header
LB: loop body
LE: loop exit
PB: predicated region body
PF: predicated region fallthrough
CT: control target
= control target key end

     0   :  { %8 = vsyncpa [#allocation3], 0  ;;  %s283_s0 = inlined_call_operand.hbm [shape: f32[20,128], index: 0, kind: input, shape index: {}]   ;;  %s284_s1 = inlined_call_operand.hbm [shape: s32[20,128], index: 1, kind: input, shape index: {}]   ;;  %s285_s2 = inlined_call_operand.hbm [shape: f32[20,128], index: 2, kind: input, shape index: {}]   ;;  %s286_s3 = inlined_call_operand.hbm [shape: f32[1,8,128], index: 3, kind: output, shape index: {}]  }
   0x1   :  { %9 = vsyncpa [#allocation6], 0 }
   0x2   :  { %10 = vsyncpa [#allocation4], 0  ;;  %s243_s12 = smov [#allocation5]   ;;  %s244_s14 = smov [#allocation2]  }
   0x3   :  { %s28_s13 = sshll.u32 %s243_s12, 4  ;;  %s16_s15 = sshll.u32 %s244_s14, 4  ;;  %s29_s13 = int_to_ptr.vmem [resolvable:$true] %s28_s13  ;;  %s17_s15 = int_to_ptr.vmem [resolvable:$true] %s16_s15 }
   0x4   :  { %s165_s16 = scalar_lea.vmem %s29_s13, 384  ;;  %p170_p1 = scmp.lt.s32.totalorder %s29_s13, %s29_s13 }
   0x5   :  { %p166_p0 = scmp.ne.s32.totalorder %s29_s13, %s165_s16  ;;  %p171_p2 = scmp.lt.s32.totalorder %s165_s16, %s165_s16 }
   0x7   :  { %p172_p3 = por %p171_p2, %p170_p1 }
   0x9   :  { %p173_p4 = pnand %p172_p3, %p166_p0 }
   0xb   :  { %176 = shalt.err (!%p173_p4)
}
   0xc   :  { %s245_s17 = smov 128   ;;  %s246_s18 = smov 8  }
   0xd   :  { %34 = dma.hbm_to_vmem [thread:$0]  %s284_s1, 384, %s29_s13, [#allocation6], %s245_s17, %s245_s17, %s246_s18  }
   0xe   :  { %s185_s21 = scalar_lea.vmem %s17_s15, 384  ;;  %p190_p6 = scmp.lt.s32.totalorder %s17_s15, %s17_s15 }
   0xf   :  { %p186_p5 = scmp.ne.s32.totalorder %s17_s15, %s185_s21  ;;  %p191_p7 = scmp.lt.s32.totalorder %s185_s21, %s185_s21 }
  0x11   :  { %p192_p8 = por %p191_p7, %p190_p6 }
  0x13   :  { %p193_p9 = pnand %p192_p8, %p186_p5 }
  0x15   :  { %196 = shalt.err (!%p193_p9)
}
  0x16   :  { %22 = dma.hbm_to_vmem [thread:$0]  %s283_s0, 384, %s17_s15, [#allocation3], %s245_s17, %s245_s17, %s246_s18  }
  0x17   :  { %s247_s24 = smov [#allocation7]  }
  0x18   :  { %s40_s25 = sshll.u32 %s247_s24, 4  ;;  %s41_s25 = int_to_ptr.vmem [resolvable:$true] %s40_s25 }
  0x19   :  { %s205_s26 = scalar_lea.vmem %s41_s25, 384  ;;  %p210_p11 = scmp.lt.s32.totalorder %s41_s25, %s41_s25 }
  0x1a   :  { %p206_p10 = scmp.ne.s32.totalorder %s41_s25, %s205_s26  ;;  %p211_p12 = scmp.lt.s32.totalorder %s205_s26, %s205_s26 }
  0x1c   :  { %p212_p13 = por %p211_p12, %p210_p11 }
  0x1e   :  { %p213_p0 = pnand %p212_p13, %p206_p10 }
  0x20   :  { %216 = shalt.err (!%p213_p0)
}
  0x21   :  { %46 = dma.hbm_to_vmem [thread:$0]  %s285_s2, 384, %s41_s25, [#allocation6], %s245_s17, %s245_s17, %s246_s18  }
  0x22   :  { %237 = dma.done.wait [#allocation3], 384  }
  0x23   :  { %238 = vsyncadd [#allocation3], 4294966912 }
  0x24   :  { %239 = dma.done.wait [#allocation6], 768  }
  0x25   :  { %240 = vsyncadd [#allocation6], 4294966528  ;;  %v62_v0 = vld [vmem:[#allocation5] sm:$0xff]  ;;  %v64_v1 = vld [vmem:[#allocation5 + $0x10] sm:$0xf]  ;;  %s248_s0 = smov 1   ;;  %v65_v3 = vlaneseq }
  0x26   :  { %67 = vrot.lane.b32.xlu0 %v62_v0, %s248_s0  ;;  %71 = vrot.lane.b32.xlu1 %v64_v1, %s248_s0  ;;  %v63_v2 = vld [vmem:[#allocation5 + $0x8] sm:$0xff]  ;;  %v58_v5 = vld [vmem:[#allocation2 + $0x10] sm:$0xf]  ;;  %v57_v11 = vld [vmem:[#allocation2 + $0x8] sm:$0xff]  ;;  %v249_v14 = vmov 0.0   ;;  %vm93_vm3 = vcmask 1043456  }
  0x27   :  { %v66_v4 = vand.u32 127, %v65_v3  ;;  %v61_v6 = vld [vmem:[#allocation7 + $0x10] sm:$0xf]  ;;  %v59_v10 = vld [vmem:[#allocation7] sm:$0xff]  ;;  %v60_v12 = vld [vmem:[#allocation7 + $0x8] sm:$0xff]  ;;  %v118_v47 = vshrl.u32 %v65_v3, 7 }
  0x28   :  { %v56_v8 = vld [vmem:[#allocation2] sm:$0xff]  ;;  %v88_v13 = vmul.f32 %v61_v6, %v58_v5  ;;  %v87_v20 = vmul.f32 %v60_v12, %v57_v11  ;;  %s250_s28 = smov [#allocation8]  }
  0x29   :  { %vm73_vm2 = vcmp.eq.s32.totalorder %v66_v4, 0  ;;  %v86_v18 = vmul.f32 %v59_v10, %v56_v8  ;;  %vm120_vm5 = vcmp.eq.s32.totalorder %v118_v47, 1  ;;  %s132_s29 = sshll.u32 %s250_s28, 4  ;;  %vm119_vm6 = vcmp.eq.s32.totalorder %v118_v47, 0  ;;  %s133_s29 = int_to_ptr.vmem [resolvable:$true] %s132_s29 }
  0x2a   :  { %69 = vrot.lane.b32.xlu0 %v63_v2, %s248_s0  ;;  %s217_s4 = scalar_lea.vmem %s133_s29, 128  ;;  %p222_p2 = scmp.lt.s32.totalorder %s133_s29, %s133_s29 }
  0x2b   :  { %p218_p1 = scmp.ne.s32.totalorder %s133_s29, %s217_s4  ;;  %p223_p3 = scmp.lt.s32.totalorder %s217_s4, %s217_s4 }
  0x2d   :  { %p224_p4 = por %p223_p3, %p222_p2 }
  0x2f   :  { %p225_p5 = pnand %p224_p4, %p218_p1 }
  0x98   :  { %v68_v7 = vpop.permute.xlu0 %67  ;;  %v72_v9 = vpop.permute.xlu1 %71 }
  0x99   :  { %vm74_vm0 = vcmp.gt.s32.totalorder %v68_v7, 0  ;;  %vm76_vm1 = vcmp.gt.s32.totalorder %v72_v9, 0 }
  0x9a   :  { %v142_v15 = vsel %vm74_vm0, 1.0, %v249_v14  ;;  %v144_v16 = vsel %vm76_vm1, 1.0, %v249_v14 }
  0x9b   :  { %v85_v17 = vsel %vm73_vm2, 1.0, %v144_v16  ;;  %v83_v21 = vsel %vm73_vm2, 1.0, %v142_v15 }
  0x9c   :  { %v70_v19 = vpop.permute.xlu0 %69  ;;  %v91_v22 = vmul.f32 %v88_v13, %v85_v17  ;;  %v106_v25 = vsel %vm93_vm3, %v85_v17, 0.0  ;;  %v89_v26 = vmul.f32 %v86_v18, %v83_v21 }
  0x9d   :  { %vm75_vm4 = vcmp.gt.s32.totalorder %v70_v19, 0 }
  0x9e   :  { %v143_v23 = vsel %vm75_vm4, 1.0, %v249_v14  ;;  %v94_v29 = vsel %vm93_vm3, %v91_v22, 0.0 }
  0x9f   :  { %v84_v24 = vsel %vm73_vm2, 1.0, %v143_v23 }
  0xa0   :  { %v90_v27 = vmul.f32 %v87_v20, %v84_v24  ;;  %v105_v28 = vadd.f32 %v84_v24, %v83_v21 }
  0xa2   :  { %v107_v30 = vadd.f32 %v106_v25, %v105_v28  ;;  %v92_v31 = vadd.f32 %v90_v27, %v89_v26 }
  0xa4   :  { %108 = vadd.xlane.f32.xlu0 %v107_v30  ;;  %v95_v32 = vadd.f32 %v94_v29, %v92_v31 }
  0xa6   :  { %96 = vadd.xlane.f32.xlu1 %v95_v32 }
 0x12d   :  { %v109_v33 = vpop.xlane.xlu0 %108 }
 0x12e   :  { %v110_v34 = vrot.slane %v109_v33, 4 }
 0x12f   :  { %v97_v35 = vpop.xlane.xlu1 %96 }
 0x130   :  { %v111_v36 = vadd.f32 %v110_v34, %v109_v33  ;;  %v98_v37 = vrot.slane %v97_v35, 4 }
 0x132   :  { %v112_v38 = vrot.slane %v111_v36, 2  ;;  %v99_v39 = vadd.f32 %v98_v37, %v97_v35 }
 0x134   :  { %v113_v40 = vadd.f32 %v112_v38, %v111_v36  ;;  %v100_v41 = vrot.slane %v99_v39, 2 }
 0x136   :  { %v101_v42 = vadd.f32 %v100_v41, %v99_v39  ;;  %v114_v43 = vrot.slane %v113_v40, 1 }
 0x138   :  { %v102_v44 = vrot.slane %v101_v42, 1  ;;  %v115_v46 = vadd.f32 %v114_v43, %v113_v40 }
 0x13a   :  { %v103_v45 = vadd.f32 %v102_v44, %v101_v42 }
 0x13c   :  { %145 = vpush %v103_v45 }
 0x13d   :  { %147 = vpush %v115_v46 }
 0x16d   :  { %s146_s2 = spop %145 }
 0x16e   :  { %v123_v48 = vstv %s146_s2  ;;  %s148_s30 = spop %147 }
 0x16f   :  { %v121_v49 = vstv %s148_s30 }
 0x170   :  { %v122_v50 = vsel %vm120_vm5, %v121_v49, 0.0 }
 0x171   :  { %v124_v51 = vsel %vm119_vm6, %v123_v48, %v122_v50 }
 0x172   :  { %125 = vst [vmem:[#allocation8] sm:$0xff] %v124_v51 }
 0x173   :  { %228 = shalt.err (!%p225_p5)
}
 0x174   :  { %135 = dma.vmem_to_hbm [thread:$0]  %s133_s29, 128, %s286_s3, [#allocation4]  }
 0x175   :  { %241 = dma.done.wait [#allocation4], 128  }
 0x176   :  { %242 = vsyncadd [#allocation4], 4294967168 }
 0x177   :  { %139 = vsyncpa [#allocation3], 1 }
 0x178   :  { %140 = vsyncpa [#allocation6], 1 }
 0x179   :  { %141 = vsyncpa [#allocation4], 1 }

</bundles_post_ra>
